<compile_context>
chip_gen: v5e
topology: v5e:2x2
jax: 0.10.0
libtpu: 0.0.40
codegen_flags: <defaults>
</compile_context>

<pallas_src>
import functools
import math

import jax
import jax.numpy as jnp
import numpy as np
from jax import lax
from jax.experimental import pallas as pl
from jax.experimental.pallas import tpu as pltpu


# ----------------------------- small helpers --------------------------------


def _pick_tile(dim, pref):
    """Full dim if it is small or ragged, else the preferred (aligned) tile."""
    if dim <= pref:
        return dim
    return pref if dim % pref == 0 else dim


def positional_embedding(qlen, d_model, dtype=jnp.float32):
    pos_seq = jnp.arange(qlen - 1, -1, -1.0, dtype=dtype)
    inv_freq = 1.0 / (10000.0 ** (jnp.arange(0.0, d_model, 2.0, dtype=dtype) / d_model))
    sinusoid = pos_seq[:, None] * inv_freq[None, :]
    return jnp.concatenate([jnp.sin(sinusoid), jnp.cos(sinusoid)], axis=-1)  # [Q, dm]


# ----------------------------- in-kernel rel_shift ---------------------------
#
# torch _rel_shift on a square [Q, Q] (i=query, j=relative) slice is exactly
#   out[i, j] = x[i, j + Q-1-i]      if j <= i
#             = 0                    if j == i+1
#             = x[i+1, j - i - 2]    if j >= i+2
# which is: a per-row cyclic lane roll by (i+1)  (the "skew"),
#           a one-row sublane roll, and an iota-mask select.


@functools.lru_cache(maxsize=None)
def _detect_skew_params(q):
    """Find (shift, stride) such that
        pltpu.roll(x, shift, 1, stride=stride, stride_axis=0)
    rolls row i of a [q, q] tile by (i + 1) (np.roll convention).
    Returns None if no candidate reproduces it; the kernel then uses a
    statically-unrolled fallback.  Must be called OUTSIDE any jit trace."""
    x = np.arange(q * q, dtype=np.float32).reshape(q, q)
    want = np.stack([np.roll(x[i], i + 1) for i in range(q)])
    for shift, stride in ((1, 1), (q - 1, q - 1), (q - 1, 1), (1, -1)):
        try:
            def probe(x_ref, o_ref, *, s=shift, st=stride):
                o_ref[...] = pltpu.roll(x_ref[...], s, 1, stride=st, stride_axis=0)

            got = pl.pallas_call(
                probe, out_shape=jax.ShapeDtypeStruct((q, q), jnp.float32)
            )(jnp.asarray(x))
            got = np.asarray(jax.block_until_ready(got))
            if np.array_equal(got, want):
                return (shift, stride)
        except Exception:
            continue
    return None


def _skew_rows(x, row, skew):
    """y[i, j] = x[i, (j - (i + 1)) % Q]   (row i cyclically rolled by i+1)."""
    qn = x.shape[-1]
    if skew is not None:
        shift, stride = skew
        return pltpu.roll(x, shift, 1, stride=stride, stride_axis=0)
    # Fallback: statically unrolled rolls + masks (correct on any toolchain;
    # only used if the probe above could not validate the strided roll).
    y = x  # rows with (i+1) % Q == 0 (i.e. i == Q-1) keep a full-period roll.
    for s in range(1, qn):
        rolled = jnp.concatenate([x[:, qn - s:], x[:, :qn - s]], axis=1)
        y = jnp.where((row + 1) % qn == s, rolled, y)
    return y


def _rel_shift_square(x, row, col, skew):
    """Exact torch _rel_shift for a square [Q, Q] score slice, in-register."""
    c = _skew_rows(x, row, skew)
    d = jnp.concatenate([c[1:, :], c[:1, :]], axis=0)  # c shifted up one row
    return jnp.where(col <= row, c,
                     jnp.where(col == row + 1, jnp.zeros_like(x), d))


# ----------------------------- Pallas kernels --------------------------------


def ln_qkv_kernel(x_ref, g_ref, b_ref, wq_ref, wk_ref, wv_ref,
                  q_ref, k_ref, v_ref):
    # LayerNorm (f32 stats, eps=1e-5, biased variance) + three projections.
    # NOTE: LN is recomputed per N-tile; that is cheap VPU work vs. the MXU dots.
    x = x_ref[...]                                            # [tm, dm] f32
    mu = jnp.mean(x, axis=-1, keepdims=True)
    var = jnp.mean((x - mu) ** 2, axis=-1, keepdims=True)
    xn = (x - mu) * lax.rsqrt(var + 1e-5)
    xn = (xn * g_ref[...] + b_ref[...]).astype(jnp.bfloat16)  # bf16 MXU operand
    q_ref[...] = jnp.dot(xn, wq_ref[...],
                         preferred_element_type=jnp.float32).astype(q_ref.dtype)
    k_ref[...] = jnp.dot(xn, wk_ref[...],
                         preferred_element_type=jnp.float32).astype(k_ref.dtype)
    v_ref[...] = jnp.dot(xn, wv_ref[...],
                         preferred_element_type=jnp.float32).astype(v_ref.dtype)


def linear_kernel(x_ref, w_ref, o_ref):
    o_ref[...] = jnp.dot(
        x_ref[...].astype(w_ref.dtype), w_ref[...],
        preferred_element_type=jnp.float32).astype(o_ref.dtype)


def out_proj_kernel(a_ref, w_ref, r_ref, o_ref):
    # residual + attn_vec @ W_o   (bf16 operands, f32 accumulation/output)
    o_ref[...] = r_ref[...] + jnp.dot(a_ref[...], w_ref[...],
                                      preferred_element_type=jnp.float32)


def fused_attn_kernel(q_ref, k_ref, v_ref, rk_ref, rwb_ref, rrb_ref, o_ref, *,
                      n_head, scale, skew):
    # Per batch element: AC, BD, rel_shift, softmax, P@V for every head, all
    # resident in VMEM/vregs.  Output is written as one lane-dense [Q, H*D] slab.
    qlen = q_ref.shape[1]
    hd = q_ref.shape[2]
    d = hd // n_head

    q = q_ref[0]          # [Q, H*D] bf16
    k = k_ref[0]
    v = v_ref[0]
    rk = rk_ref[...]      # [Q, H*D] bf16 (grid-invariant block, stays resident)
    rwb = rwb_ref[...]    # [1, H*D] bf16
    rrb = rrb_ref[...]

    row = lax.broadcasted_iota(jnp.int32, (qlen, qlen), 0)
    col = lax.broadcasted_iota(jnp.int32, (qlen, qlen), 1)
    dims = (((1,), (1,)), ((), ()))      # A @ B^T, contracting d_head

    head_outs = []
    for h in range(n_head):              # static unroll over heads
        sl = slice(h * d, (h + 1) * d)
        qh, kh, vh, rkh = q[:, sl], k[:, sl], v[:, sl], rk[:, sl]

        ac = lax.dot_general(qh + rwb[:, sl], kh, dims,
                             preferred_element_type=jnp.float32)   # [Q, Q]
        bd = lax.dot_general(qh + rrb[:, sl], rkh, dims,
                             preferred_element_type=jnp.float32)   # [Q, Q]
        bd = _rel_shift_square(bd, row, col, skew)

        s = (ac + bd) * scale
        m = jnp.max(s, axis=-1, keepdims=True)
        e = jnp.exp(s - m)
        p = e * pl.reciprocal(jnp.sum(e, axis=-1, keepdims=True), approx=True)
        head_outs.append(jnp.dot(p.astype(vh.dtype), vh,
                                 preferred_element_type=jnp.float32))

    o_ref[0] = jnp.concatenate(head_outs, axis=-1).astype(o_ref.dtype)


# ----------------------------- pallas_call wrappers --------------------------


def ln_qkv(x, gamma, beta, wq, wk, wv):
    m, k = x.shape
    n = wq.shape[1]
    tm = _pick_tile(m, 256)
    tn = _pick_tile(n, 256)
    row_spec = pl.BlockSpec((tm, k), lambda i, j: (i, 0))
    vec_spec = pl.BlockSpec((1, k), lambda i, j: (0, 0))
    w_spec = pl.BlockSpec((k, tn), lambda i, j: (0, j))
    out_spec = pl.BlockSpec((tm, tn), lambda i, j: (i, j))
    out_sd = jax.ShapeDtypeStruct((m, n), jnp.bfloat16)
    return pl.pallas_call(
        ln_qkv_kernel,
        grid=(m // tm, n // tn),
        in_specs=[row_spec, vec_spec, vec_spec, w_spec, w_spec, w_spec],
        out_specs=(out_spec, out_spec, out_spec),
        out_shape=(out_sd, out_sd, out_sd),
        compiler_params=pltpu.CompilerParams(
            dimension_semantics=("parallel", "parallel")),
    )(x, gamma, beta, wq, wk, wv)


def linear(x, w, out_dtype=jnp.bfloat16):
    m, k = x.shape
    n = w.shape[1]
    tm = _pick_tile(m, 256)
    tn = _pick_tile(n, 256)
    return pl.pallas_call(
        linear_kernel,
        grid=(m // tm, n // tn),
        in_specs=[pl.BlockSpec((tm, k), lambda i, j: (i, 0)),
                  pl.BlockSpec((k, tn), lambda i, j: (0, j))],
        out_specs=pl.BlockSpec((tm, tn), lambda i, j: (i, j)),
        out_shape=jax.ShapeDtypeStruct((m, n), out_dtype),
        compiler_params=pltpu.CompilerParams(
            dimension_semantics=("parallel", "parallel")),
    )(x, w)


def out_proj_residual(a, w, res):
    m, k = a.shape
    n = w.shape[1]
    tm = _pick_tile(m, 256)
    tn = _pick_tile(n, 256)
    return pl.pallas_call(
        out_proj_kernel,
        grid=(m // tm, n // tn),
        in_specs=[pl.BlockSpec((tm, k), lambda i, j: (i, 0)),
                  pl.BlockSpec((k, tn), lambda i, j: (0, j)),
                  pl.BlockSpec((tm, tn), lambda i, j: (i, j))],
        out_specs=pl.BlockSpec((tm, tn), lambda i, j: (i, j)),
        out_shape=jax.ShapeDtypeStruct((m, n), jnp.float32),
        compiler_params=pltpu.CompilerParams(
            dimension_semantics=("parallel", "parallel")),
    )(a, w, res)


def fused_attention(q, k, v, rk, rwb, rrb, *, n_head, scale, skew):
    b, qlen, hd = q.shape
    bqd_spec = pl.BlockSpec((1, qlen, hd), lambda i: (i, 0, 0))
    rk_spec = pl.BlockSpec((qlen, hd), lambda i: (0, 0))
    bias_spec = pl.BlockSpec((1, hd), lambda i: (0, 0))
    kern = functools.partial(fused_attn_kernel,
                             n_head=n_head, scale=scale, skew=skew)
    return pl.pallas_call(
        kern,
        grid=(b,),
        in_specs=[bqd_spec, bqd_spec, bqd_spec, rk_spec, bias_spec, bias_spec],
        out_specs=bqd_spec,
        out_shape=jax.ShapeDtypeStruct((b, qlen, hd), jnp.bfloat16),
        compiler_params=pltpu.CompilerParams(dimension_semantics=("parallel",)),
    )(q, k, v, rk, rwb, rrb)


# ----------------------------- forward pass ----------------------------------


def rel_multihead_attn_forward(w, params, n_head):
    # TODO(synk): dropout/dropatt are identity (inference); attn_mask=None and
    #             mems=None paths only, matching the exercised torch branch.
    qlen, bsz, dm = w.shape
    h = n_head
    d = dm // h
    hd = h * d
    scale = 1.0 / math.sqrt(d)

    r = positional_embedding(qlen, dm, jnp.float32)            # [Q, dm]

    # Weights / biases cast to bf16 once (MXU operands); accumulation stays f32.
    wq = params["w_qkv"][:, :hd].astype(jnp.bfloat16)
    wk = params["w_qkv"][:, hd:2 * hd].astype(jnp.bfloat16)
    wv = params["w_qkv"][:, 2 * hd:].astype(jnp.bfloat16)
    wr = params["w_r"].astype(jnp.bfloat16)
    wo = params["w_o"].astype(jnp.bfloat16)
    rwb = params["r_w_bias"].reshape(1, hd).astype(jnp.bfloat16)
    rrb = params["r_r_bias"].reshape(1, hd).astype(jnp.bfloat16)

    # Single layout change of the input/residual stream: [Q,B,dm] -> [B,Q,dm].
    # Everything downstream stays batch-major and lane-dense (all other v1
    # transposes are gone); folded back at the very end.
    w_bq = jnp.transpose(w, (1, 0, 2))
    x2d = w_bq.reshape(bsz * qlen, dm)

    q2d, k2d, v2d = ln_qkv(x2d, params["ln_gamma"], params["ln_beta"],
                           wq, wk, wv)                         # each [B*Q, H*D] bf16
    rk = linear(r, wr)                                         # [Q, H*D] bf16

    skew = _detect_skew_params(qlen)   # one-time, cached per qlen (eager probe)

    attn = fused_attention(
        q2d.reshape(bsz, qlen, hd), k2d.reshape(bsz, qlen, hd),
        v2d.reshape(bsz, qlen, hd), rk, rwb, rrb,
        n_head=h, scale=scale, skew=skew)                      # [B, Q, H*D] bf16

    out2d = out_proj_residual(attn.reshape(bsz * qlen, hd), wo, x2d)
    return jnp.transpose(out2d.reshape(bsz, qlen, dm), (1, 0, 2))


# ----------------------------- pure-JAX reference (torch semantics) ----------


def reference_forward(w, params, n_head):
    Q, B, dm = w.shape
    H = n_head
    D = dm // H
    scale = 1.0 / (D ** 0.5)
    r = positional_embedding(Q, dm, w.dtype)

    mu = w.mean(-1, keepdims=True)
    var = ((w - mu) ** 2).mean(-1, keepdims=True)
    wn = (w - mu) / jnp.sqrt(var + 1e-5)
    wn = wn * params["ln_gamma"].reshape(-1) + params["ln_beta"].reshape(-1)

    w_heads = wn @ params["w_qkv"]
    r_head_k = (r @ params["w_r"]).reshape(Q, H, D)
    hq, hk, hv = jnp.split(w_heads, 3, axis=-1)
    hq = hq.reshape(Q, B, H, D)
    hk = hk.reshape(Q, B, H, D)
    hv = hv.reshape(Q, B, H, D)

    AC = jnp.einsum("ibnd,jbnd->ijbn", hq + params["r_w_bias"], hk)
    BD = jnp.einsum("ibnd,jnd->ijbn", hq + params["r_r_bias"], r_head_k)
    zp = jnp.zeros((Q, 1, B, H), BD.dtype)
    bp = jnp.concatenate([zp, BD], axis=1).reshape(Q + 1, Q, B, H)
    BD = bp[1:].reshape(Q, Q, B, H)

    score = (AC + BD) * scale
    prob = jax.nn.softmax(score, axis=1)
    vec = jnp.einsum("ijbn,jbnd->ibnd", prob, hv).reshape(Q, B, H * D)
    return w + vec @ params["w_o"]


# ----------------------------- main -------------------------------------------


if __name__ == "__main__":
    key = jax.random.PRNGKey(0)
    Q, B, dm, H = 8, 2, 32, 4          # qlen=8, bsz=2, d_model=32, n_head=4 -> d_head=8
    D = dm // H
    ks = jax.random.split(key, 6)

    w = jax.random.normal(ks[0], (Q, B, dm), jnp.float32)
    params = dict(
        ln_gamma=jnp.ones((1, dm), jnp.float32),     # nn.LayerNorm default init
        ln_beta=jnp.zeros((1, dm), jnp.float32),
        # Linear weights stored already transposed as [in, out] (synthetic init).
        w_qkv=0.02 * jax.random.normal(ks[1], (dm, 3 * H * D), jnp.float32),
        w_r=0.02 * jax.random.normal(ks[2], (dm, H * D), jnp.float32),
        w_o=0.02 * jax.random.normal(ks[3], (H * D, dm), jnp.float32),
        r_w_bias=0.02 * jax.random.normal(ks[4], (H, D), jnp.float32),
        r_r_bias=0.02 * jax.random.normal(ks[5], (H, D), jnp.float32),
    )

    out = jax.block_until_ready(rel_multihead_attn_forward(w, params, H))
    ref = jax.block_until_ready(reference_forward(w, params, H))

    assert out.shape == (Q, B, dm)
    assert bool(jnp.all(jnp.isfinite(out)))
    max_err = float(jnp.max(jnp.abs(out - ref)))
    assert max_err < 2e-3, f"mismatch vs reference: {max_err}"
    print("KERNEL_OK")
</pallas_src>

<mosaic_0001>
module attributes {stable_mosaic.version = 11 : i64} {
  func.func @ln_qkv_kernel(%arg0: i32, %arg1: i32, %arg2: memref<16x32xf32, #tpu.memory_space<vmem>>, %arg3: memref<1x32xf32, #tpu.memory_space<vmem>>, %arg4: memref<1x32xf32, #tpu.memory_space<vmem>>, %arg5: memref<32x32xbf16, #tpu.memory_space<vmem>>, %arg6: memref<32x32xbf16, #tpu.memory_space<vmem>>, %arg7: memref<32x32xbf16, #tpu.memory_space<vmem>>, %arg8: memref<16x32xbf16, #tpu.memory_space<vmem>>, %arg9: memref<16x32xbf16, #tpu.memory_space<vmem>>, %arg10: memref<16x32xbf16, #tpu.memory_space<vmem>>) attributes {dimension_semantics = [#tpu.dimension_semantics<parallel>, #tpu.dimension_semantics<parallel>], iteration_bounds = array<i64: 1, 1>, scalar_prefetch = 0 : i64, scratch_operands = 0 : i64, tpu.core_type = #tpu.core_type<tc>, window_params = [{transform_indices = @transform_0, window_bounds = array<i64: 16, 32>}, {pipeline_mode = #tpu.pipeline_mode<synchronous>, transform_indices = @transform_1, window_bounds = array<i64: 1, 32>}, {pipeline_mode = #tpu.pipeline_mode<synchronous>, transform_indices = @transform_2, window_bounds = array<i64: 1, 32>}, {transform_indices = @transform_3, window_bounds = array<i64: 32, 32>}, {transform_indices = @transform_4, window_bounds = array<i64: 32, 32>}, {transform_indices = @transform_5, window_bounds = array<i64: 32, 32>}, {transform_indices = @transform_6, window_bounds = array<i64: 16, 32>}, {transform_indices = @transform_7, window_bounds = array<i64: 16, 32>}, {transform_indices = @transform_8, window_bounds = array<i64: 16, 32>}]} {
    %c0 = arith.constant 0 : index
    %c0_0 = arith.constant 0 : index
    %0 = vector.load %arg2[%c0, %c0_0] : memref<16x32xf32, #tpu.memory_space<vmem>>, vector<16x32xf32>
    %cst = arith.constant dense<0.000000e+00> : vector<16xf32>
    %1 = vector.multi_reduction <add>, %0, %cst [1] : vector<16x32xf32> to vector<16xf32>
    %2 = vector.shape_cast %1 : vector<16xf32> to vector<16x1xf32>
    %cst_1 = arith.constant 3.200000e+01 : f32
    %3 = vector.broadcast %cst_1 : f32 to vector<16x1xf32>
    %4 = arith.divf %2, %3 : vector<16x1xf32>
    %5 = vector.broadcast %4 : vector<16x1xf32> to vector<16x32xf32>
    %6 = arith.subf %0, %5 : vector<16x32xf32>
    %7 = arith.mulf %6, %6 : vector<16x32xf32>
    %cst_2 = arith.constant dense<0.000000e+00> : vector<16xf32>
    %8 = vector.multi_reduction <add>, %7, %cst_2 [1] : vector<16x32xf32> to vector<16xf32>
    %9 = vector.shape_cast %8 : vector<16xf32> to vector<16x1xf32>
    %cst_3 = arith.constant 3.200000e+01 : f32
    %10 = vector.broadcast %cst_3 : f32 to vector<16x1xf32>
    %11 = arith.divf %9, %10 : vector<16x1xf32>
    %12 = vector.broadcast %4 : vector<16x1xf32> to vector<16x32xf32>
    %13 = arith.subf %0, %12 : vector<16x32xf32>
    %cst_4 = arith.constant 9.99999974E-6 : f32
    %14 = vector.broadcast %cst_4 : f32 to vector<16x1xf32>
    %15 = arith.addf %11, %14 : vector<16x1xf32>
    %16 = math.rsqrt %15 : vector<16x1xf32>
    %17 = vector.broadcast %16 : vector<16x1xf32> to vector<16x32xf32>
    %18 = arith.mulf %13, %17 : vector<16x32xf32>
    %c0_5 = arith.constant 0 : index
    %c0_6 = arith.constant 0 : index
    %19 = vector.load %arg3[%c0_5, %c0_6] : memref<1x32xf32, #tpu.memory_space<vmem>>, vector<1x32xf32>
    %20 = vector.broadcast %19 : vector<1x32xf32> to vector<16x32xf32>
    %21 = arith.mulf %18, %20 : vector<16x32xf32>
    %c0_7 = arith.constant 0 : index
    %c0_8 = arith.constant 0 : index
    %22 = vector.load %arg4[%c0_7, %c0_8] : memref<1x32xf32, #tpu.memory_space<vmem>>, vector<1x32xf32>
    %23 = vector.broadcast %22 : vector<1x32xf32> to vector<16x32xf32>
    %24 = arith.addf %21, %23 : vector<16x32xf32>
    %25 = arith.truncf %24 : vector<16x32xf32> to vector<16x32xbf16>
    %c0_9 = arith.constant 0 : index
    %c0_10 = arith.constant 0 : index
    %26 = vector.load %arg5[%c0_9, %c0_10] : memref<32x32xbf16, #tpu.memory_space<vmem>>, vector<32x32xbf16>
    %cst_11 = arith.constant dense<0.000000e+00> : vector<16x32xf32>
    %27 = tpu.matmul %25, %26, %cst_11 {dimension_numbers = #tpu.dot_dimension_numbers<[1], [0], [0], [1], [0, 0, 1, 1], [], []>} : vector<16x32xbf16>, vector<32x32xbf16>, vector<16x32xf32> -> vector<16x32xf32>
    %28 = arith.truncf %27 : vector<16x32xf32> to vector<16x32xbf16>
    %c0_12 = arith.constant 0 : index
    %c0_13 = arith.constant 0 : index
    %29 = vector.load %arg8[%c0_12, %c0_13] : memref<16x32xbf16, #tpu.memory_space<vmem>>, vector<16x32xbf16>
    tpu.vector_store %arg8[%c0_12, %c0_13], %28 {strides = array<i32>} : memref<16x32xbf16, #tpu.memory_space<vmem>>, vector<16x32xbf16>,
    %c0_14 = arith.constant 0 : index
    %c0_15 = arith.constant 0 : index
    %30 = vector.load %arg6[%c0_14, %c0_15] : memref<32x32xbf16, #tpu.memory_space<vmem>>, vector<32x32xbf16>
    %cst_16 = arith.constant dense<0.000000e+00> : vector<16x32xf32>
    %31 = tpu.matmul %25, %30, %cst_16 {dimension_numbers = #tpu.dot_dimension_numbers<[1], [0], [0], [1], [0, 0, 1, 1], [], []>} : vector<16x32xbf16>, vector<32x32xbf16>, vector<16x32xf32> -> vector<16x32xf32>
    %32 = arith.truncf %31 : vector<16x32xf32> to vector<16x32xbf16>
    %c0_17 = arith.constant 0 : index
    %c0_18 = arith.constant 0 : index
    %33 = vector.load %arg9[%c0_17, %c0_18] : memref<16x32xbf16, #tpu.memory_space<vmem>>, vector<16x32xbf16>
    tpu.vector_store %arg9[%c0_17, %c0_18], %32 {strides = array<i32>} : memref<16x32xbf16, #tpu.memory_space<vmem>>, vector<16x32xbf16>,
    %c0_19 = arith.constant 0 : index
    %c0_20 = arith.constant 0 : index
    %34 = vector.load %arg7[%c0_19, %c0_20] : memref<32x32xbf16, #tpu.memory_space<vmem>>, vector<32x32xbf16>
    %cst_21 = arith.constant dense<0.000000e+00> : vector<16x32xf32>
    %35 = tpu.matmul %25, %34, %cst_21 {dimension_numbers = #tpu.dot_dimension_numbers<[1], [0], [0], [1], [0, 0, 1, 1], [], []>} : vector<16x32xbf16>, vector<32x32xbf16>, vector<16x32xf32> -> vector<16x32xf32>
    %36 = arith.truncf %35 : vector<16x32xf32> to vector<16x32xbf16>
    %c0_22 = arith.constant 0 : index
    %c0_23 = arith.constant 0 : index
    %37 = vector.load %arg10[%c0_22, %c0_23] : memref<16x32xbf16, #tpu.memory_space<vmem>>, vector<16x32xbf16>
    tpu.vector_store %arg10[%c0_22, %c0_23], %36 {strides = array<i32>} : memref<16x32xbf16, #tpu.memory_space<vmem>>, vector<16x32xbf16>,
    return
  }
  func.func @transform_0(%arg0: i32, %arg1: i32) -> (i32, i32) {
    %c0_i32 = arith.constant 0 : i32
    %c0_i32_0 = arith.constant 0 : i32
    return %arg0, %c0_i32 : i32, i32
  }
  func.func @transform_1(%arg0: i32, %arg1: i32) -> (i32, i32) {
    %c0_i32 = arith.constant 0 : i32
    %c0_i32_0 = arith.constant 0 : i32
    %c0_i32_1 = arith.constant 0 : i32
    return %c0_i32, %c0_i32_0 : i32, i32
  }
  func.func @transform_2(%arg0: i32, %arg1: i32) -> (i32, i32) {
    %c0_i32 = arith.constant 0 : i32
    %c0_i32_0 = arith.constant 0 : i32
    %c0_i32_1 = arith.constant 0 : i32
    return %c0_i32, %c0_i32_0 : i32, i32
  }
  func.func @transform_3(%arg0: i32, %arg1: i32) -> (i32, i32) {
    %c0_i32 = arith.constant 0 : i32
    %c0_i32_0 = arith.constant 0 : i32
    return %c0_i32, %arg1 : i32, i32
  }
  func.func @transform_4(%arg0: i32, %arg1: i32) -> (i32, i32) {
    %c0_i32 = arith.constant 0 : i32
    %c0_i32_0 = arith.constant 0 : i32
    return %c0_i32, %arg1 : i32, i32
  }
  func.func @transform_5(%arg0: i32, %arg1: i32) -> (i32, i32) {
    %c0_i32 = arith.constant 0 : i32
    %c0_i32_0 = arith.constant 0 : i32
    return %c0_i32, %arg1 : i32, i32
  }
  func.func @transform_6(%arg0: i32, %arg1: i32) -> (i32, i32) {
    %c0_i32 = arith.constant 0 : i32
    return %arg0, %arg1 : i32, i32
  }
  func.func @transform_7(%arg0: i32, %arg1: i32) -> (i32, i32) {
    %c0_i32 = arith.constant 0 : i32
    return %arg0, %arg1 : i32, i32
  }
  func.func @transform_8(%arg0: i32, %arg1: i32) -> (i32, i32) {
    %c0_i32 = arith.constant 0 : i32
    return %arg0, %arg1 : i32, i32
  }
}

</mosaic_0001>

<bundles_post_ra>
// kernel: tpu_custom_call.1
= control target key start
LH: loop header
LB: loop body
LE: loop exit
PB: predicated region body
PF: predicated region fallthrough
CT: control target
= control target key end

     0   :  { %14 = vsyncpa [#allocation3], 0  ;;  %s706_s0 = inlined_call_operand.hbm [shape: f32[16,32], index: 0, kind: input, shape index: {}]   ;;  %s707_s1 = inlined_call_operand.hbm [shape: f32[1,32], index: 1, kind: input, shape index: {}]   ;;  %s708_s2 = inlined_call_operand.vmem [shape: f32[1,32], index: 2, kind: input, shape index: {}]   ;;  %s709_s3 = inlined_call_operand.hbm [shape: bf16[32,32], index: 3, kind: input, shape index: {}]   ;;  %s710_s4 = inlined_call_operand.hbm [shape: bf16[32,32], index: 4, kind: input, shape index: {}]   ;;  %s711_s5 = inlined_call_operand.hbm [shape: bf16[32,32], index: 5, kind: input, shape index: {}]   ;;  %s712_s6 = inlined_call_operand.hbm [shape: bf16[16,32], index: 6, kind: output, shape index: {0}]   ;;  %s713_s7 = inlined_call_operand.hbm [shape: bf16[16,32], index: 7, kind: output, shape index: {1}]   ;;  %s714_s8 = inlined_call_operand.hbm [shape: bf16[16,32], index: 8, kind: output, shape index: {2}]  }
   0x1   :  { %15 = vsyncpa [#allocation6], 0 }
   0x2   :  { %16 = vsyncpa [#allocation9], 0 }
   0x3   :  { %17 = vsyncpa [#allocation4], 0  ;;  %s37_s29 = sshll.u32 %s707_s1, 4  ;;  %s38_s29 = int_to_ptr.hbm [resolvable:$true] %s37_s29 }
   0x4   :  { %18 = vsyncpa [#allocation13], 0  ;;  %s590_s30 = smov [#allocation5]   ;;  %s62_s12 = sshll.u32 %s710_s4, 4  ;;  %s63_s12 = int_to_ptr.hbm [resolvable:$true] %s62_s12 }
   0x5   :  { %s39_s9 = sshll.u32 %s590_s30, 4  ;;  %s591_s13 = smov [#allocation8]   ;;  %s40_s9 = int_to_ptr.vmem [resolvable:$true] %s39_s9 }
   0x6   :  { %42 = dma.hbm_to_vmem [thread:$0]  %s38_s29, 16, %s40_s9, [#allocation6]  }
   0x7   :  { %s64_s14 = sshll.u32 %s591_s13, 4  ;;  %s23_s17 = sshll.u32 %s706_s0, 4  ;;  %s65_s14 = int_to_ptr.vmem [resolvable:$true] %s64_s14  ;;  %s24_s17 = int_to_ptr.hbm [resolvable:$true] %s23_s17 }
   0x8   :  { %s592_s1 = smov 64   ;;  %s593_s18 = smov 4  }
   0x9   :  { %70 = dma.hbm_to_vmem [thread:$0]  %s63_s12, 256, %s65_s14, [#allocation9], %s592_s1, %s592_s1, %s593_s18  }
   0xa   :  { %s594_s19 = smov [#allocation2]   ;;  %s49_s22 = sshll.u32 %s709_s3, 4  ;;  %s50_s22 = int_to_ptr.hbm [resolvable:$true] %s49_s22 }
   0xb   :  { %s25_s20 = sshll.u32 %s594_s19, 4  ;;  %s595_s23 = smov 128   ;;  %s26_s20 = int_to_ptr.vmem [resolvable:$true] %s25_s20 }
   0xc   :  { %s596_s24 = smov 8   ;;  %s597_s0 = smov [#allocation7]  }
   0xd   :  { %31 = dma.hbm_to_vmem [thread:$0]  %s24_s17, 256, %s26_s20, [#allocation3], %s595_s23, %s595_s23, %s596_s24  }
   0xe   :  { %s51_s25 = sshll.u32 %s597_s0, 4  ;;  %s75_s28 = sshll.u32 %s711_s5, 4  ;;  %s52_s25 = int_to_ptr.vmem [resolvable:$true] %s51_s25  ;;  %s76_s28 = int_to_ptr.hbm [resolvable:$true] %s75_s28 }
   0xf   :  { %57 = dma.hbm_to_vmem [thread:$0]  %s50_s22, 256, %s52_s25, [#allocation6], %s592_s1, %s592_s1, %s593_s18  }
  0x10   :  { %s598_s29 = smov [#allocation10]  }
  0x11   :  { %s77_s30 = sshll.u32 %s598_s29, 4  ;;  %s78_s30 = int_to_ptr.vmem [resolvable:$true] %s77_s30 }
  0x12   :  { %83 = dma.hbm_to_vmem [thread:$0]  %s76_s28, 256, %s78_s30, [#allocation9], %s592_s1, %s592_s1, %s593_s18  }
  0x13   :  { %580 = dma.done.wait [#allocation3], 256  }
  0x14   :  { %581 = vsyncadd [#allocation3], 4294967040 }
  0x15   :  { %582 = dma.done.wait [#allocation6], 272  }
  0x16   :  { %583 = vsyncadd [#allocation6], 4294967024 }
  0x17   :  { %584 = dma.done.wait [#allocation9], 512  }
  0x18   :  { %585 = vsyncadd [#allocation9], 4294966784  ;;  %vm107_vm0 = vcmask 261120   ;;  %v105_v0 = vld [vmem:[#allocation2] sm:$0xff]  ;;  %v106_v2 = vld [vmem:[#allocation2 + $0x8] sm:$0xff]  ;;  %v599_v4 = vmov 32.0  }
  0x19   :  { %v108_v1 = vsel %vm107_vm0, %v105_v0, 0.0  ;;  %v111_v3 = vsel %vm107_vm0, %v106_v2, 0.0  ;;  %382 = vrcp.f32 %v599_v4  ;;  %v362_v21 = vld [vmem:[#allocation7 + $0x8] sm:$0xff]  ;;  %v364_v22 = vld [vmem:[#allocation8 + $0x8] sm:$0xff]  ;;  %v361_v25 = vld [vmem:[#allocation7] sm:$0xff]  ;;  %vm207_vm8 = vcmask 257024  }
  0x1a   :  { %109 = vadd.xlane.f32.xlu0 %v108_v1  ;;  %v366_v23 = vld [vmem:[#allocation10 + $0x8] sm:$0xff]  ;;  %197 = vmatpush.bf16.msra.mxu0 %v362_v21  ;;  %v363_v26 = vld [vmem:[#allocation8] sm:$0xff]  ;;  %v365_v28 = vld [vmem:[#allocation10] sm:$0xff]  ;;  %s284_s12 = sshll.u32 %s712_s6, 4  ;;  %s601_s13 = smov [#allocation12]   ;;  %s285_s12 = int_to_ptr.hbm [resolvable:$true] %s284_s12 }
  0x1b   :  { %232 = vmatpush.bf16.msra.mxu1 %v364_v22  ;;  %266 = vmatpush.bf16.msra.mxu2 %v366_v23  ;;  %v380_v46 = vld [vmem:[#allocation5] ss:$0 sm:$0xff]  ;;  %v381_v51 = vld [vmem:[%s708_s2] ss:$0 sm:$0xff]  ;;  %s600_s2 = smov [#allocation11]   ;;  %s295_s14 = sshll.u32 %s601_s13, 4  ;;  %s296_s14 = int_to_ptr.vmem [resolvable:$true] %s295_s14 }
  0x1c   :  { %s282_s9 = sshll.u32 %s600_s2, 4  ;;  %s297_s17 = sshll.u32 %s713_s7, 4  ;;  %s283_s9 = int_to_ptr.vmem [resolvable:$true] %s282_s9  ;;  %s298_s17 = int_to_ptr.hbm [resolvable:$true] %s297_s17 }
  0x1d   :  { %s602_s6 = smov [#allocation14]   ;;  %s310_s4 = sshll.u32 %s714_s8, 4  ;;  %s311_s4 = int_to_ptr.hbm [resolvable:$true] %s310_s4 }
  0x1e   :  { %198 = vmatpush.bf16.msra.mxu0 %v361_v25  ;;  %s308_s19 = sshll.u32 %s602_s6, 4  ;;  %s309_s19 = int_to_ptr.vmem [resolvable:$true] %s308_s19 }
  0x1f   :  { %v383_v5 = vpop.eup %382  ;;  %233 = vmatpush.bf16.msra.mxu1 %v363_v26  ;;  %267 = vmatpush.bf16.msra.mxu2 %v365_v28 }
  0x20   :  { %v115_v6 = vmul.f32 32.0, %v383_v5  ;;  %vm119_vm1 = vweird.f32 %v383_v5 }
  0x22   :  { %112 = vadd.xlane.f32.xlu0 %v111_v3  ;;  %v116_v7 = vsub.f32 1.0, %v115_v6 }
  0x24   :  { %v117_v8 = vmul.f32 %v383_v5, %v116_v7 }
  0x26   :  { %v118_v9 = vadd.f32 %v383_v5, %v117_v8 }
  0x28   :  { %v120_v10 = vsel %vm119_vm1, %v383_v5, %v118_v9 }
  0x8d   :  { %v110_v11 = vpop.xlane.xlu0 %109 }
  0x8e   :  { %v121_v12 = vmul.f32 %v120_v10, %v110_v11 }
  0x90   :  { %v123_v13 = vsub.f32 %v105_v0, %v121_v12 }
  0x92   :  { %v125_v14 = vmul.f32 %v123_v13, %v123_v13 }
  0x94   :  { %v127_v15 = vsel %vm107_vm0, %v125_v14, 0.0 }
  0x95   :  { %128 = vadd.xlane.f32.xlu1 %v127_v15  ;;  %v113_v16 = vpop.xlane.xlu0 %112 }
  0x96   :  { %v122_v17 = vmul.f32 %v120_v10, %v113_v16 }
  0x98   :  { %v124_v18 = vsub.f32 %v106_v2, %v122_v17 }
  0x9a   :  { %v126_v19 = vmul.f32 %v124_v18, %v124_v18 }
  0x9c   :  { %v130_v20 = vsel %vm107_vm0, %v126_v19, 0.0 }
  0x9d   :  { %131 = vadd.xlane.f32.xlu1 %v130_v20 }
 0x108   :  { %v129_v24 = vpop.xlane.xlu1 %128 }
 0x109   :  { %v133_v27 = vmul.f32 %v129_v24, %v120_v10 }
 0x10b   :  { %v135_v29 = vadd.f32 1e-05, %v133_v27 }
 0x10d   :  { %384 = vrsqrt.f32 %v135_v29  ;;  %vm143_vm3 = vweird.f32 %v135_v29 }
 0x110   :  { %v132_v30 = vpop.xlane.xlu1 %131 }
 0x111   :  { %v134_v31 = vmul.f32 %v132_v30, %v120_v10 }
 0x113   :  { %v385_v32 = vpop.eup %384  ;;  %v136_v33 = vadd.f32 1e-05, %v134_v31 }
 0x114   :  { %v138_v34 = vmul.f32 %v385_v32, %v135_v29  ;;  %vm144_vm2 = vweird.f32 %v385_v32 }
 0x115   :  { %386 = vrsqrt.f32 %v136_v33  ;;  %vm145_vm4 = vmor %vm143_vm3, %vm144_vm2  ;;  %vm153_vm6 = vweird.f32 %v136_v33 }
 0x116   :  { %v139_v35 = vmul.f32 %v385_v32, %v138_v34 }
 0x118   :  { %v140_v36 = vmul.f32 0.5, %v139_v35 }
 0x11a   :  { %v141_v37 = vsub.f32 1.5, %v140_v36 }
 0x11b   :  { %v387_v38 = vpop.eup %386 }
 0x11c   :  { %v142_v39 = vmul.f32 %v385_v32, %v141_v37  ;;  %v148_v40 = vmul.f32 %v387_v38, %v136_v33  ;;  %vm154_vm5 = vweird.f32 %v387_v38 }
 0x11d   :  { %vm155_vm7 = vmor %vm153_vm6, %vm154_vm5 }
 0x11e   :  { %v149_v41 = vmul.f32 %v387_v38, %v148_v40  ;;  %v146_v42 = vsel %vm145_vm4, %v385_v32, %v142_v39 }
 0x11f   :  { %v157_v45 = vmul.f32 %v146_v42, %v123_v13 }
 0x120   :  { %v150_v43 = vmul.f32 0.5, %v149_v41 }
 0x121   :  { %v163_v50 = vmul.f32 %v380_v46, %v157_v45 }
 0x122   :  { %v151_v44 = vsub.f32 1.5, %v150_v43 }
 0x123   :  { %v169_v53 = vadd.f32 %v381_v51, %v163_v50 }
 0x124   :  { %v152_v47 = vmul.f32 %v387_v38, %v151_v44 }
 0x126   :  { %v156_v48 = vsel %vm155_vm7, %v387_v38, %v152_v47 }
 0x127   :  { %v158_v49 = vmul.f32 %v156_v48, %v124_v18 }
 0x129   :  { %v164_v52 = vmul.f32 %v380_v46, %v158_v49 }
 0x12b   :  { %v170_v54 = vadd.f32 %v381_v51, %v164_v52 }
 0x12d   :  { %v171_v55 = vpack.c.bf16 %v170_v54, %v169_v53 }
 0x12f   :  { %342 = vmatmul.msk.bf16.vlgmr.msra.gmra.mxu0 %vm107_vm0, %v171_v55  ;;  %351 = vmatmul.msk.bf16.vlgmr.msra.gmra.mxu1 %vm107_vm0, %v171_v55 }
 0x130   :  { %360 = vmatmul.msk.bf16.vlgmr.msra.gmra.mxu2 %vm107_vm0, %v171_v55 }
 0x1ac   :  { %v200_v56 = vpop.f32.mrf.mxu0  ;;  %v235_v57 = vpop.f32.mrf.mxu1 }
 0x1ad   :  { %v205_v58 = vpack.c.bf16 %v200_v56, %v200_v56  ;;  %v240_v59 = vpack.c.bf16 %v235_v57, %v235_v57 }
 0x1af   :  { %208 = vst.msk [vmem:[#allocation11] sm:$0xf] %vm207_vm8, %v205_v58 }
 0x1b0   :  { %242 = vst.msk [vmem:[#allocation12] sm:$0xf] %vm207_vm8, %v240_v59 }
 0x1b3   :  { %v269_v60 = vpop.f32.mrf.mxu2 }
 0x1b4   :  { %v274_v61 = vpack.c.bf16 %v269_v60, %v269_v60  ;;  %v202_v62 = vpop.f32.mrf.mxu0  ;;  %v237_v63 = vpop.f32.mrf.mxu1 }
 0x1b5   :  { %v206_v0 = vpack.c.bf16 %v202_v62, %v202_v62  ;;  %v241_v1 = vpack.c.bf16 %v237_v63, %v237_v63 }
 0x1b6   :  { %276 = vst.msk [vmem:[#allocation14] sm:$0xf] %vm207_vm8, %v274_v61 }
 0x1b7   :  { %209 = vst.msk [vmem:[#allocation11 + $0x4] sm:$0xf] %vm207_vm8, %v206_v0 }
 0x1b8   :  { %243 = vst.msk [vmem:[#allocation12 + $0x4] sm:$0xf] %vm207_vm8, %v241_v1  ;;  %290 = dma.vmem_to_hbm [thread:$0]  %s283_s9, 128, %s285_s12, [#allocation4], %s592_s1, %s592_s1, %s593_s18  }
 0x1b9   :  { %303 = dma.vmem_to_hbm [thread:$0]  %s296_s14, 128, %s298_s17, [#allocation13], %s592_s1, %s592_s1, %s593_s18  }
 0x1bb   :  { %v271_v2 = vpop.f32.mrf.mxu2 }
 0x1bc   :  { %v275_v3 = vpack.c.bf16 %v271_v2, %v271_v2 }
 0x1be   :  { %277 = vst.msk [vmem:[#allocation14 + $0x4] sm:$0xf] %vm207_vm8, %v275_v3 }
 0x1bf   :  { %316 = dma.vmem_to_hbm [thread:$0]  %s309_s19, 128, %s311_s4, [#allocation13], %s592_s1, %s592_s1, %s593_s18  }
 0x1c0   :  { %586 = dma.done.wait [#allocation4], 128  }
 0x1c1   :  { %587 = vsyncadd [#allocation4], 4294967168 }
 0x1c2   :  { %588 = dma.done.wait [#allocation13], 256  }
 0x1c3   :  { %589 = vsyncadd [#allocation13], 4294967040 }
 0x1c4   :  { %329 = vsyncpa [#allocation3], 1 }
 0x1c5   :  { %330 = vsyncpa [#allocation6], 1 }
 0x1c6   :  { %331 = vsyncpa [#allocation9], 1 }
 0x1c7   :  { %332 = vsyncpa [#allocation4], 1 }
 0x1c8   :  { %333 = vsyncpa [#allocation13], 1 }

</bundles_post_ra>
